<compile_context>
chip_gen: v6e
topology: v6e:2x2x1
jax: 0.10.0
libtpu: 0.0.40
codegen_flags: <defaults>
</compile_context>

<pallas_src>
import math

import jax
import jax.numpy as jnp
from jax.experimental import pallas as pl
from jax.experimental.pallas import tpu as pltpu


def _gelu(x):
    # tanh-form GELU (EUP tanh slot).  PyTorch nn.GELU defaults to the exact
    # erf form; the tanh approximation differs by < ~1e-3 absolute.
    # TODO(synk): switch to erf-based GELU if exact-erf lowering is required.
    c = 0.7978845608028654  # sqrt(2/pi)
    return 0.5 * x * (1.0 + jnp.tanh(c * (x + 0.044715 * x * x * x)))


def _mlp_kernel(x_ref, w1_ref, b1_ref, w2_ref, b2_ref, w3_ref, b3_ref, o_ref):
    # x_ref: (tile_rows, C_in)   one tile of flattened tokens
    # w*/b*: full weight matrices / (1, features) biases, VMEM-resident
    # o_ref: (tile_rows, C_out)
    x = x_ref[...].astype(jnp.float32)

    h = jnp.dot(x, w1_ref[...].astype(jnp.float32),
                preferred_element_type=jnp.float32)
    h = _gelu(h + b1_ref[...].astype(jnp.float32))

    h = jnp.dot(h, w2_ref[...].astype(jnp.float32),
                preferred_element_type=jnp.float32)
    h = _gelu(h + b2_ref[...].astype(jnp.float32))

    y = jnp.dot(h, w3_ref[...].astype(jnp.float32),
                preferred_element_type=jnp.float32)
    y = y + b3_ref[...].astype(jnp.float32)

    o_ref[...] = y.astype(o_ref.dtype)


def _round_up(v, m):
    return ((v + m - 1) // m) * m


def mlp_forward(x, params, H=None, W=None, *, tile_rows=512):
    """x: (..., in_features) -> (..., out_features).

    params = (w1, b1, w2, b2, w3, b3) with weights in (in, out) layout
    (PyTorch stores (out, in); transpose once when importing weights).
    H, W are unused, matching the PyTorch forward signature.
    Dropout(drop=0.0) is the identity and therefore omitted.
    """
    w1, b1, w2, b2, w3, b3 = params
    c_in = x.shape[-1]
    hidden = w1.shape[1]
    c_out = w3.shape[1]
    assert w1.shape == (c_in, hidden)
    assert w2.shape == (hidden, hidden)
    assert w3.shape == (hidden, c_out)

    lead_shape = x.shape[:-1]
    rows = int(math.prod(lead_shape)) if lead_shape else 1
    x2d = x.reshape(rows, c_in)

    # Biases as (1, F) rows so they broadcast over the row tile in-kernel.
    b1_2d = b1.reshape(1, hidden)
    b2_2d = b2.reshape(1, hidden)
    b3_2d = b3.reshape(1, c_out)

    # Large row tiles (per-grid-step overhead ~0.35 us); pad rows up to a
    # multiple of the tile instead of shrinking the tile per-input.
    tile_rows = max(8, min(tile_rows, _round_up(rows, 8)))
    padded_rows = _round_up(rows, tile_rows)
    if padded_rows != rows:
        x2d = jnp.pad(x2d, ((0, padded_rows - rows), (0, 0)))

    grid = (padded_rows // tile_rows,)

    out2d = pl.pallas_call(
        _mlp_kernel,
        out_shape=jax.ShapeDtypeStruct((padded_rows, c_out), x.dtype),
        grid_spec=pltpu.PrefetchScalarGridSpec(
            num_scalar_prefetch=0,
            grid=grid,
            in_specs=[
                pl.BlockSpec((tile_rows, c_in), lambda i: (i, 0)),
                # Weights/biases: constant block index -> fetched once,
                # resident in VMEM for every grid step.
                pl.BlockSpec((c_in, hidden), lambda i: (0, 0)),
                pl.BlockSpec((1, hidden), lambda i: (0, 0)),
                pl.BlockSpec((hidden, hidden), lambda i: (0, 0)),
                pl.BlockSpec((1, hidden), lambda i: (0, 0)),
                pl.BlockSpec((hidden, c_out), lambda i: (0, 0)),
                pl.BlockSpec((1, c_out), lambda i: (0, 0)),
            ],
            out_specs=pl.BlockSpec((tile_rows, c_out), lambda i: (i, 0)),
        ),
        compiler_params=pltpu.CompilerParams(
            dimension_semantics=("parallel",),
        ),
    )(x2d, w1, b1_2d, w2, b2_2d, w3, b3_2d)

    if padded_rows != rows:
        out2d = out2d[:rows]
    return out2d.reshape(*lead_shape, c_out)


def _reference(x, params):
    w1, b1, w2, b2, w3, b3 = params
    xf = x.astype(jnp.float32)
    h = _gelu(xf @ w1.astype(jnp.float32) + b1.reshape(1, -1).astype(jnp.float32))
    h = _gelu(h @ w2.astype(jnp.float32) + b2.reshape(1, -1).astype(jnp.float32))
    y = h @ w3.astype(jnp.float32) + b3.reshape(1, -1).astype(jnp.float32)
    return y.astype(x.dtype)


if __name__ == "__main__":
    # Small deterministic example consistent with the module's forward:
    # tokens x of shape (batch, H*W, in_features).
    B, H, W = 2, 8, 8
    in_features, hidden_features, out_features = 32, 64, 32

    key = jax.random.PRNGKey(0)
    k = jax.random.split(key, 7)
    x = jax.random.normal(k[0], (B, H * W, in_features), dtype=jnp.float32)
    # trunc_normal(std=0.02)-scale weights; small random biases to exercise the add.
    w1 = (jax.random.normal(k[1], (in_features, hidden_features)) * 0.02).astype(jnp.float32)
    b1 = (jax.random.normal(k[2], (hidden_features,)) * 0.02).astype(jnp.float32)
    w2 = (jax.random.normal(k[3], (hidden_features, hidden_features)) * 0.02).astype(jnp.float32)
    b2 = (jax.random.normal(k[4], (hidden_features,)) * 0.02).astype(jnp.float32)
    w3 = (jax.random.normal(k[5], (hidden_features, out_features)) * 0.02).astype(jnp.float32)
    b3 = (jax.random.normal(k[6], (out_features,)) * 0.02).astype(jnp.float32)
    params = (w1, b1, w2, b2, w3, b3)

    out = mlp_forward(x, params, H, W)
    out = jax.block_until_ready(out)

    ref = _reference(x, params)
    assert out.shape == (B, H * W, out_features), f"bad output shape {out.shape}"
    assert jnp.allclose(out, ref, atol=2e-3, rtol=2e-3), "mismatch vs reference"

    print("KERNEL_OK")
</pallas_src>

<mosaic_0001>
module attributes {stable_mosaic.version = 11 : i64} {
  func.func @_mlp_kernel(%arg0: i32, %arg1: memref<128x32xf32, #tpu.memory_space<vmem>>, %arg2: memref<32x64xf32, #tpu.memory_space<vmem>>, %arg3: memref<1x64xf32, #tpu.memory_space<vmem>>, %arg4: memref<64x64xf32, #tpu.memory_space<vmem>>, %arg5: memref<1x64xf32, #tpu.memory_space<vmem>>, %arg6: memref<64x32xf32, #tpu.memory_space<vmem>>, %arg7: memref<1x32xf32, #tpu.memory_space<vmem>>, %arg8: memref<128x32xf32, #tpu.memory_space<vmem>>) attributes {dimension_semantics = [#tpu.dimension_semantics<parallel>], iteration_bounds = array<i64: 1>, scalar_prefetch = 0 : i64, scratch_operands = 0 : i64, tpu.core_type = #tpu.core_type<tc>, window_params = [{transform_indices = @transform_0, window_bounds = array<i64: 128, 32>}, {pipeline_mode = #tpu.pipeline_mode<synchronous>, transform_indices = @transform_1, window_bounds = array<i64: 32, 64>}, {pipeline_mode = #tpu.pipeline_mode<synchronous>, transform_indices = @transform_2, window_bounds = array<i64: 1, 64>}, {pipeline_mode = #tpu.pipeline_mode<synchronous>, transform_indices = @transform_3, window_bounds = array<i64: 64, 64>}, {pipeline_mode = #tpu.pipeline_mode<synchronous>, transform_indices = @transform_4, window_bounds = array<i64: 1, 64>}, {pipeline_mode = #tpu.pipeline_mode<synchronous>, transform_indices = @transform_5, window_bounds = array<i64: 64, 32>}, {pipeline_mode = #tpu.pipeline_mode<synchronous>, transform_indices = @transform_6, window_bounds = array<i64: 1, 32>}, {transform_indices = @transform_7, window_bounds = array<i64: 128, 32>}]} {
    %c0 = arith.constant 0 : index
    %c0_0 = arith.constant 0 : index
    %0 = vector.load %arg1[%c0, %c0_0] : memref<128x32xf32, #tpu.memory_space<vmem>>, vector<128x32xf32>
    %c0_1 = arith.constant 0 : index
    %c0_2 = arith.constant 0 : index
    %1 = vector.load %arg2[%c0_1, %c0_2] : memref<32x64xf32, #tpu.memory_space<vmem>>, vector<32x64xf32>
    %cst = arith.constant dense<0.000000e+00> : vector<128x64xf32>
    %2 = tpu.matmul %0, %1, %cst {dimension_numbers = #tpu.dot_dimension_numbers<[1], [0], [0], [1], [0, 0, 1, 1], [], []>} : vector<128x32xf32>, vector<32x64xf32>, vector<128x64xf32> -> vector<128x64xf32>
    %c0_3 = arith.constant 0 : index
    %c0_4 = arith.constant 0 : index
    %3 = vector.load %arg3[%c0_3, %c0_4] : memref<1x64xf32, #tpu.memory_space<vmem>>, vector<1x64xf32>
    %4 = vector.broadcast %3 : vector<1x64xf32> to vector<128x64xf32>
    %5 = arith.addf %2, %4 : vector<128x64xf32>
    %cst_5 = arith.constant 5.000000e-01 : f32
    %6 = vector.broadcast %cst_5 : f32 to vector<128x64xf32>
    %7 = arith.mulf %6, %5 : vector<128x64xf32>
    %cst_6 = arith.constant 4.471500e-02 : f32
    %8 = vector.broadcast %cst_6 : f32 to vector<128x64xf32>
    %9 = arith.mulf %8, %5 : vector<128x64xf32>
    %10 = arith.mulf %9, %5 : vector<128x64xf32>
    %11 = arith.mulf %10, %5 : vector<128x64xf32>
    %12 = arith.addf %5, %11 : vector<128x64xf32>
    %cst_7 = arith.constant 0.797884583 : f32
    %13 = vector.broadcast %cst_7 : f32 to vector<128x64xf32>
    %14 = arith.mulf %13, %12 : vector<128x64xf32>
    %15 = math.tanh %14 : vector<128x64xf32>
    %cst_8 = arith.constant 1.000000e+00 : f32
    %16 = vector.broadcast %cst_8 : f32 to vector<128x64xf32>
    %17 = arith.addf %16, %15 : vector<128x64xf32>
    %18 = arith.mulf %7, %17 : vector<128x64xf32>
    %c0_9 = arith.constant 0 : index
    %c0_10 = arith.constant 0 : index
    %19 = vector.load %arg4[%c0_9, %c0_10] : memref<64x64xf32, #tpu.memory_space<vmem>>, vector<64x64xf32>
    %cst_11 = arith.constant dense<0.000000e+00> : vector<128x64xf32>
    %20 = tpu.matmul %18, %19, %cst_11 {dimension_numbers = #tpu.dot_dimension_numbers<[1], [0], [0], [1], [0, 0, 1, 1], [], []>} : vector<128x64xf32>, vector<64x64xf32>, vector<128x64xf32> -> vector<128x64xf32>
    %c0_12 = arith.constant 0 : index
    %c0_13 = arith.constant 0 : index
    %21 = vector.load %arg5[%c0_12, %c0_13] : memref<1x64xf32, #tpu.memory_space<vmem>>, vector<1x64xf32>
    %22 = vector.broadcast %21 : vector<1x64xf32> to vector<128x64xf32>
    %23 = arith.addf %20, %22 : vector<128x64xf32>
    %cst_14 = arith.constant 5.000000e-01 : f32
    %24 = vector.broadcast %cst_14 : f32 to vector<128x64xf32>
    %25 = arith.mulf %24, %23 : vector<128x64xf32>
    %cst_15 = arith.constant 4.471500e-02 : f32
    %26 = vector.broadcast %cst_15 : f32 to vector<128x64xf32>
    %27 = arith.mulf %26, %23 : vector<128x64xf32>
    %28 = arith.mulf %27, %23 : vector<128x64xf32>
    %29 = arith.mulf %28, %23 : vector<128x64xf32>
    %30 = arith.addf %23, %29 : vector<128x64xf32>
    %cst_16 = arith.constant 0.797884583 : f32
    %31 = vector.broadcast %cst_16 : f32 to vector<128x64xf32>
    %32 = arith.mulf %31, %30 : vector<128x64xf32>
    %33 = math.tanh %32 : vector<128x64xf32>
    %cst_17 = arith.constant 1.000000e+00 : f32
    %34 = vector.broadcast %cst_17 : f32 to vector<128x64xf32>
    %35 = arith.addf %34, %33 : vector<128x64xf32>
    %36 = arith.mulf %25, %35 : vector<128x64xf32>
    %c0_18 = arith.constant 0 : index
    %c0_19 = arith.constant 0 : index
    %37 = vector.load %arg6[%c0_18, %c0_19] : memref<64x32xf32, #tpu.memory_space<vmem>>, vector<64x32xf32>
    %cst_20 = arith.constant dense<0.000000e+00> : vector<128x32xf32>
    %38 = tpu.matmul %36, %37, %cst_20 {dimension_numbers = #tpu.dot_dimension_numbers<[1], [0], [0], [1], [0, 0, 1, 1], [], []>} : vector<128x64xf32>, vector<64x32xf32>, vector<128x32xf32> -> vector<128x32xf32>
    %c0_21 = arith.constant 0 : index
    %c0_22 = arith.constant 0 : index
    %39 = vector.load %arg7[%c0_21, %c0_22] : memref<1x32xf32, #tpu.memory_space<vmem>>, vector<1x32xf32>
    %40 = vector.broadcast %39 : vector<1x32xf32> to vector<128x32xf32>
    %41 = arith.addf %38, %40 : vector<128x32xf32>
    %c0_23 = arith.constant 0 : index
    %c0_24 = arith.constant 0 : index
    %42 = vector.load %arg8[%c0_23, %c0_24] : memref<128x32xf32, #tpu.memory_space<vmem>>, vector<128x32xf32>
    tpu.vector_store %arg8[%c0_23, %c0_24], %41 {strides = array<i32>} : memref<128x32xf32, #tpu.memory_space<vmem>>, vector<128x32xf32>,
    return
  }
  func.func @transform_0(%arg0: i32) -> (i32, i32) {
    %c0_i32 = arith.constant 0 : i32
    %c0_i32_0 = arith.constant 0 : i32
    return %arg0, %c0_i32 : i32, i32
  }
  func.func @transform_1(%arg0: i32) -> (i32, i32) {
    %c0_i32 = arith.constant 0 : i32
    %c0_i32_0 = arith.constant 0 : i32
    %c0_i32_1 = arith.constant 0 : i32
    return %c0_i32, %c0_i32_0 : i32, i32
  }
  func.func @transform_2(%arg0: i32) -> (i32, i32) {
    %c0_i32 = arith.constant 0 : i32
    %c0_i32_0 = arith.constant 0 : i32
    %c0_i32_1 = arith.constant 0 : i32
    return %c0_i32, %c0_i32_0 : i32, i32
  }
  func.func @transform_3(%arg0: i32) -> (i32, i32) {
    %c0_i32 = arith.constant 0 : i32
    %c0_i32_0 = arith.constant 0 : i32
    %c0_i32_1 = arith.constant 0 : i32
    return %c0_i32, %c0_i32_0 : i32, i32
  }
  func.func @transform_4(%arg0: i32) -> (i32, i32) {
    %c0_i32 = arith.constant 0 : i32
    %c0_i32_0 = arith.constant 0 : i32
    %c0_i32_1 = arith.constant 0 : i32
    return %c0_i32, %c0_i32_0 : i32, i32
  }
  func.func @transform_5(%arg0: i32) -> (i32, i32) {
    %c0_i32 = arith.constant 0 : i32
    %c0_i32_0 = arith.constant 0 : i32
    %c0_i32_1 = arith.constant 0 : i32
    return %c0_i32, %c0_i32_0 : i32, i32
  }
  func.func @transform_6(%arg0: i32) -> (i32, i32) {
    %c0_i32 = arith.constant 0 : i32
    %c0_i32_0 = arith.constant 0 : i32
    %c0_i32_1 = arith.constant 0 : i32
    return %c0_i32, %c0_i32_0 : i32, i32
  }
  func.func @transform_7(%arg0: i32) -> (i32, i32) {
    %c0_i32 = arith.constant 0 : i32
    %c0_i32_0 = arith.constant 0 : i32
    return %arg0, %c0_i32 : i32, i32
  }
}

</mosaic_0001>

<bundles_post_ra>
// kernel: tpu_custom_call.1
= control target key start
LH: loop header
LB: loop body
LE: loop exit
PB: predicated region body
PF: predicated region fallthrough
CT: control target
= control target key end

     0   :  { %vm53_vm0 = vcmask 261120   ;;  %vm406_vm1 = vcmask 523264   ;;  %s1797_s1 = inlined_call_operand.vmem [shape: f32[32,64], index: 1, kind: input, shape index: {}]   ;;  %s1798_s0 = inlined_call_operand.vmem [shape: f32[128,32], index: 0, kind: input, shape index: {}]   ;;  %s1799_s3 = inlined_call_operand.vmem [shape: f32[64,64], index: 3, kind: input, shape index: {}]   ;;  %s1800_s2 = inlined_call_operand.vmem [shape: f32[1,64], index: 2, kind: input, shape index: {}]   ;;  %s1801_s5 = inlined_call_operand.vmem [shape: f32[64,32], index: 5, kind: input, shape index: {}]   ;;  %s1802_s4 = inlined_call_operand.vmem [shape: f32[1,64], index: 4, kind: input, shape index: {}]   ;;  %s1803_s6 = inlined_call_operand.vmem [shape: f32[1,32], index: 6, kind: input, shape index: {}]   ;;  %s1804_s7 = inlined_call_operand.vmem [shape: f32[128,32], index: 7, kind: output, shape index: {}]  }
   0x1   :  { %v45_v0 = vld [vmem:[%s1797_s1 + $0x18] sm:$0xff]  ;;  %v44_v1 = vld [vmem:[%s1797_s1 + $0x10] sm:$0xff]  ;;  %v43_v2 = vld [vmem:[%s1797_s1 + $0x8] sm:$0xff] }
   0x2   :  { %1091 = vmatprep.subr.mxu0 %v45_v0  ;;  %1203 = vmatprep.subr.mxu1 %v45_v0  ;;  %v42_v3 = vld [vmem:[%s1797_s1] sm:$0xff]  ;;  %v27_v6 = vld [vmem:[%s1798_s0 + $0x8] sm:$0xff]  ;;  %v28_v8 = vld [vmem:[%s1798_s0 + $0x10] sm:$0xff] }
   0x3   :  { %1092 = vmatpush3.msra.mxu0 %v45_v0  ;;  %1207 = vmatpush3.msra.mxu1 %v45_v0  ;;  %v26_v4 = vld [vmem:[%s1798_s0] sm:$0xff]  ;;  %v35_v7 = vld [vmem:[%s1798_s0 + $0x48] sm:$0xff]  ;;  %v36_v9 = vld [vmem:[%s1798_s0 + $0x50] sm:$0xff] }
   0x4   :  { %1093 = vmatprep.subr.mxu0 %v44_v1  ;;  %1204 = vmatprep.subr.mxu1 %v44_v1  ;;  %v34_v5 = vld [vmem:[%s1798_s0 + $0x40] sm:$0xff]  ;;  %v29_v10 = vld [vmem:[%s1798_s0 + $0x18] sm:$0xff]  ;;  %v31_v14 = vld [vmem:[%s1798_s0 + $0x28] sm:$0xff] }
   0x5   :  { %1094 = vmatpush3.msra.mxu0 %v44_v1  ;;  %1208 = vmatpush3.msra.mxu1 %v44_v1  ;;  %v37_v11 = vld [vmem:[%s1798_s0 + $0x58] sm:$0xff]  ;;  %v30_v12 = vld [vmem:[%s1798_s0 + $0x20] sm:$0xff]  ;;  %v39_v15 = vld [vmem:[%s1798_s0 + $0x68] sm:$0xff] }
   0x6   :  { %1095 = vmatprep.subr.mxu0 %v43_v2  ;;  %1205 = vmatprep.subr.mxu1 %v43_v2  ;;  %v38_v13 = vld [vmem:[%s1798_s0 + $0x60] sm:$0xff]  ;;  %v32_v16 = vld [vmem:[%s1798_s0 + $0x30] sm:$0xff]  ;;  %v33_v18 = vld [vmem:[%s1798_s0 + $0x38] sm:$0xff] }
   0x7   :  { %1096 = vmatpush3.msra.mxu0 %v43_v2  ;;  %1209 = vmatpush3.msra.mxu1 %v43_v2  ;;  %v40_v17 = vld [vmem:[%s1798_s0 + $0x70] sm:$0xff]  ;;  %v41_v19 = vld [vmem:[%s1798_s0 + $0x78] sm:$0xff]  ;;  %v396_v22 = vld [vmem:[%s1799_s3 + $0x28] sm:$0xff] }
   0x8   :  { %1097 = vmatprep.subr.mxu0 %v42_v3  ;;  %1206 = vmatprep.subr.mxu1 %v42_v3  ;;  %v398_v20 = vld [vmem:[%s1799_s3 + $0x38] sm:$0xff]  ;;  %v397_v21 = vld [vmem:[%s1799_s3 + $0x30] sm:$0xff]  ;;  %v395_v23 = vld [vmem:[%s1799_s3 + $0x20] sm:$0xff] }
   0x9   :  { %1098 = vmatpush3.msra.mxu0 %v42_v3  ;;  %1210 = vmatpush3.msra.mxu1 %v42_v3  ;;  %v394_v24 = vld [vmem:[%s1799_s3 + $0x18] sm:$0xff]  ;;  %v393_v25 = vld [vmem:[%s1799_s3 + $0x10] sm:$0xff]  ;;  %v392_v26 = vld [vmem:[%s1799_s3 + $0x8] sm:$0xff] }
   0xa   :  { %1099 = vmatprep.mubr.msk.f32.mxu0 %vm53_vm0, %v26_v4  ;;  %1111 = vmatprep.mubr.msk.f32.mxu1 %vm53_vm0, %v34_v5  ;;  %v391_v27 = vld [vmem:[%s1799_s3] sm:$0xff] }
   0xb   :  { %1100 = vmatmul.mubr.msk.f32.vlgmr.msra.gmra.mxu0 %vm53_vm0, %v27_v6  ;;  %1112 = vmatmul.mubr.msk.f32.vlgmr.msra.gmra.mxu1 %vm53_vm0, %v35_v7  ;;  %v1418_v28 = vld [vmem:[%s1800_s2] ss:$0 sm:$0xff] }
   0xc   :  { %1102 = vmatprep.mubr.msk.f32.mxu0 %vm53_vm0, %v28_v8  ;;  %1114 = vmatprep.mubr.msk.f32.mxu1 %vm53_vm0, %v36_v9 }
   0xd   :  { %1123 = vmatprep.subr.mxu1 %v398_v20 }
   0xe   :  { %1124 = vmatpush3.msra.mxu1 %v398_v20 }
   0xf   :  { %1103 = vmatmul.mubr.msk.f32.gmra.mxu0 %vm53_vm0, %v29_v10  ;;  %1115 = vmatmul.mubr.msk.f32.gmra.mxu1 %vm53_vm0, %v37_v11 }
  0x10   :  { %1105 = vmatprep.mubr.msk.f32.mxu0 %vm53_vm0, %v30_v12  ;;  %1117 = vmatprep.mubr.msk.f32.mxu1 %vm53_vm0, %v38_v13 }
  0x11   :  { %1125 = vmatprep.subr.mxu1 %v397_v21 }
  0x12   :  { %1126 = vmatpush3.msra.mxu1 %v397_v21 }
  0x13   :  { %1106 = vmatmul.mubr.msk.f32.gmra.mxu0 %vm53_vm0, %v31_v14  ;;  %1118 = vmatmul.mubr.msk.f32.gmra.mxu1 %vm53_vm0, %v39_v15 }
  0x14   :  { %1108 = vmatprep.mubr.msk.f32.mxu0 %vm53_vm0, %v32_v16  ;;  %1120 = vmatprep.mubr.msk.f32.mxu1 %vm53_vm0, %v40_v17 }
  0x15   :  { %1127 = vmatprep.subr.mxu1 %v396_v22 }
  0x16   :  { %1128 = vmatpush3.msra.mxu1 %v396_v22 }
  0x17   :  { %1109 = vmatmul.mubr.msk.f32.gmra.mxu0 %vm53_vm0, %v33_v18  ;;  %1121 = vmatmul.mubr.msk.f32.gmra.mxu1 %vm53_vm0, %v41_v19 }
  0x18   :  { %1129 = vmatprep.subr.mxu1 %v395_v23 }
  0x19   :  { %1130 = vmatpush3.msra.mxu1 %v395_v23 }
  0x1a   :  { %1131 = vmatprep.subr.mxu1 %v394_v24 }
  0x1b   :  { %1132 = vmatpush3.msra.mxu1 %v394_v24 }
  0x1c   :  { %1133 = vmatprep.subr.mxu1 %v393_v25 }
  0x1d   :  { %1134 = vmatpush3.msra.mxu1 %v393_v25 }
  0x1e   :  { %1135 = vmatprep.subr.mxu1 %v392_v26 }
  0x1f   :  { %1136 = vmatpush3.msra.mxu1 %v392_v26 }
  0x20   :  { %1137 = vmatprep.subr.mxu1 %v391_v27 }
  0x21   :  { %1138 = vmatpush3.msra.mxu1 %v391_v27 }
  0xcb   :  { %v1101_v29 = vpop.f32.mrf.mxu0  ;;  %v1113_v30 = vpop.f32.mrf.mxu1 }
  0xcc   :  { %v1421_v31 = vadd.f32 %v1101_v29, %v1418_v28  ;;  %v1428_v36 = vadd.f32 %v1113_v30, %v1418_v28 }
  0xcd   :  { %v168_v32 = vpop.f32.mrf.mxu0  ;;  %v208_v33 = vpop.f32.mrf.mxu1 }
  0xce   :  { %v264_v34 = vmul.f32 0.044715, %v1421_v31  ;;  %v1425_v35 = vadd.f32 %v1418_v28, %v168_v32  ;;  %v1436_v42 = vadd.f32 %v1418_v28, %v208_v33  ;;  %v272_v46 = vmul.f32 0.044715, %v1428_v36 }
  0xcf   :  { %v1104_v37 = vpop.f32.mrf.mxu0  ;;  %v1116_v38 = vpop.f32.mrf.mxu1 }
  0xd0   :  { %v280_v39 = vmul.f32 %v264_v34, %v1421_v31  ;;  %v263_v40 = vmul.f32 0.044715, %v1425_v35  ;;  %v1433_v41 = vadd.f32 %v1104_v37, %v1418_v28  ;;  %v271_v52 = vmul.f32 0.044715, %v1436_v42 }
  0xd1   :  { %v178_v43 = vpop.f32.mrf.mxu0  ;;  %v218_v44 = vpop.f32.mrf.mxu1  ;;  %v288_v59 = vmul.f32 %v272_v46, %v1428_v36  ;;  %v1459_v0 = vadd.f32 %v1116_v38, %v1418_v28 }
  0xd2   :  { %v296_v45 = vmul.f32 %v280_v39, %v1421_v31  ;;  %v266_v47 = vmul.f32 0.044715, %v1433_v41  ;;  %v1442_v48 = vadd.f32 %v1418_v28, %v178_v43  ;;  %v279_v51 = vmul.f32 %v263_v40, %v1425_v35 }
  0xd3   :  { %v1107_v49 = vpop.f32.mrf.mxu0  ;;  %v1119_v50 = vpop.f32.mrf.mxu1  ;;  %v1448_v54 = vadd.f32 %v1418_v28, %v218_v44  ;;  %v287_v2 = vmul.f32 %v271_v52, %v1436_v42  ;;  %v304_v10 = vmul.f32 %v288_v59, %v1428_v36  ;;  %v274_v15 = vmul.f32 0.044715, %v1459_v0 }
  0xd4   :  { %v265_v53 = vmul.f32 0.044715, %v1442_v48  ;;  %v312_v57 = vadd.f32 %v296_v45, %v1421_v31  ;;  %v1452_v58 = vadd.f32 %v1107_v49, %v1418_v28  ;;  %v282_v60 = vmul.f32 %v266_v47, %v1433_v41 }
  0xd5   :  { %v188_v55 = vpop.f32.mrf.mxu0  ;;  %v228_v56 = vpop.f32.mrf.mxu1  ;;  %v295_v63 = vmul.f32 %v279_v51, %v1425_v35  ;;  %v273_v3 = vmul.f32 0.044715, %v1448_v54  ;;  %v303_v18 = vmul.f32 %v287_v2, %v1436_v42  ;;  %v1489_v24 = vadd.f32 %v1119_v50, %v1418_v28 }
  0xd6   :  { %v281_v61 = vmul.f32 %v265_v53, %v1442_v48  ;;  %v268_v1 = vmul.f32 0.044715, %v1452_v58  ;;  %v1465_v4 = vadd.f32 %v1418_v28, %v188_v55  ;;  %v328_v6 = vmul.f32 0.7978846, %v312_v57 }
  0xd7   :  { %v1110_v62 = vpop.f32.mrf.mxu0  ;;  %v1122_v5 = vpop.f32.mrf.mxu1  ;;  %v298_v11 = vmul.f32 %v282_v60, %v1433_v41  ;;  %v311_v14 = vadd.f32 %v295_v63, %v1425_v35  ;;  %v1478_v16 = vadd.f32 %v1418_v28, %v228_v56  ;;  %v289_v19 = vmul.f32 %v273_v3, %v1448_v54 }
  0xd8   :  { %v284_v7 = vmul.f32 %v268_v1, %v1452_v58  ;;  %v1469_v8 = vadd.f32 %v1110_v62, %v1418_v28  ;;  %v297_v12 = vmul.f32 %v281_v61, %v1442_v48  ;;  %v267_v13 = vmul.f32 0.044715, %v1465_v4 }
  0xd9   :  { %v198_v9 = vpop.f32.mrf.mxu0  ;;  %v238_v22 = vpop.f32.mrf.mxu1  ;;  %1211 = vtanh.f32 %v328_v6  ;;  %v314_v26 = vadd.f32 %v298_v11, %v1433_v41  ;;  %v275_v32 = vmul.f32 0.044715, %v1478_v16  ;;  %v327_v37 = vmul.f32 0.7978846, %v311_v14 }
  0xda   :  { %v270_v17 = vmul.f32 0.044715, %v1469_v8  ;;  %v283_v20 = vmul.f32 %v267_v13, %v1465_v4  ;;  %v1485_v21 = vadd.f32 %v1418_v28, %v198_v9  ;;  %v300_v23 = vmul.f32 %v284_v7, %v1452_v58 }
  0xdb   :  { %v313_v27 = vadd.f32 %v297_v12, %v1442_v48  ;;  %v1499_v34 = vadd.f32 %v1418_v28, %v238_v22  ;;  %v319_v38 = vadd.f32 %v303_v18, %v1436_v42  ;;  %v290_v39 = vmul.f32 %v274_v15, %v1459_v0 }
  0xdc   :  { %v286_v25 = vmul.f32 %v270_v17, %v1469_v8  ;;  %v299_v29 = vmul.f32 %v283_v20, %v1465_v4  ;;  %v269_v30 = vmul.f32 0.044715, %v1485_v21  ;;  %v316_v44 = vadd.f32 %v300_v23, %v1452_v58 }
  0xdd   :  { %v276_v45 = vmul.f32 0.044715, %v1489_v24  ;;  %v1508_v46 = vadd.f32 %v1122_v5, %v1418_v28  ;;  %1213 = vtanh.f32 %v327_v37  ;;  %v305_v47 = vmul.f32 %v289_v19, %v1448_v54 }
  0xde   :  { %v302_v33 = vmul.f32 %v286_v25, %v1469_v8  ;;  %v315_v40 = vadd.f32 %v299_v29, %v1465_v4  ;;  %v285_v43 = vmul.f32 %v269_v30, %v1485_v21  ;;  %v329_v51 = vmul.f32 0.7978846, %v313_v27 }
  0xdf   :  { %v291_v52 = vmul.f32 %v275_v32, %v1478_v16  ;;  %v277_v53 = vmul.f32 0.044715, %v1499_v34  ;;  %v330_v55 = vmul.f32 0.7978846, %v314_v26  ;;  %v320_v57 = vadd.f32 %v304_v10, %v1428_v36 }
  0xe0   :  { %v318_v49 = vadd.f32 %v302_v33, %v1469_v8  ;;  %v301_v50 = vmul.f32 %v285_v43, %v1485_v21  ;;  %v331_v56 = vmul.f32 0.7978846, %v315_v40  ;;  %v306_v59 = vmul.f32 %v290_v39, %v1459_v0 }
  0xe1   :  { %1215 = vtanh.f32 %v329_v51  ;;  %v292_v60 = vmul.f32 %v276_v45, %v1489_v24  ;;  %v278_v61 = vmul.f32 0.044715, %v1508_v46  ;;  %v332_v62 = vmul.f32 0.7978846, %v316_v44 }
  0xe2   :  { %v317_v28 = vadd.f32 %v301_v50, %v1485_v21  ;;  %1217 = vtanh.f32 %v330_v55  ;;  %v321_v63 = vadd.f32 %v305_v47, %v1448_v54  ;;  %v334_v2 = vmul.f32 0.7978846, %v318_v49 }
  0xe3   :  { %1219 = vtanh.f32 %v331_v56  ;;  %v307_v3 = vmul.f32 %v291_v52, %v1478_v16  ;;  %v293_v5 = vmul.f32 %v277_v53, %v1499_v34  ;;  %v335_v6 = vmul.f32 0.7978846, %v319_v38 }
  0xe4   :  { %v333_v1 = vmul.f32 0.7978846, %v317_v28  ;;  %1221 = vtanh.f32 %v332_v62  ;;  %v308_v7 = vmul.f32 %v292_v60, %v1489_v24  ;;  %v294_v9 = vmul.f32 %v278_v61, %v1508_v46 }
  0xe5   :  { %v322_v11 = vadd.f32 %v306_v59, %v1459_v0  ;;  %v336_v12 = vmul.f32 0.7978846, %v320_v57  ;;  %v323_v13 = vadd.f32 %v307_v3, %v1478_v16  ;;  %v309_v14 = vmul.f32 %v293_v5, %v1499_v34 }
  0xe6   :  { %1223 = vtanh.f32 %v333_v1  ;;  %v1212_v10 = vpop.eup %1211  ;;  %v337_v15 = vmul.f32 0.7978846, %v321_v63  ;;  %v324_v17 = vadd.f32 %v308_v7, %v1489_v24  ;;  %v310_v18 = vmul.f32 %v294_v9, %v1508_v46 }
  0xe7   :  { %1225 = vtanh.f32 %v334_v2  ;;  %v360_v20 = vadd.f32 1.0, %v1212_v10  ;;  %v247_v22 = vmul.f32 0.5, %v1425_v35  ;;  %v338_v23 = vmul.f32 0.7978846, %v322_v11 }
  0xe8   :  { %1227 = vtanh.f32 %v335_v6  ;;  %v325_v25 = vadd.f32 %v309_v14, %v1499_v34  ;;  %v339_v27 = vmul.f32 0.7978846, %v323_v13  ;;  %v248_v29 = vmul.f32 0.5, %v1421_v31 }
  0xe9   :  { %1229 = vtanh.f32 %v336_v12  ;;  %v326_v32 = vadd.f32 %v310_v18, %v1508_v46  ;;  %v340_v37 = vmul.f32 0.7978846, %v324_v17  ;;  %v249_v40 = vmul.f32 0.5, %v1442_v48 }
  0xea   :  { %v1214_v19 = vpop.eup %1213  ;;  %1231 = vtanh.f32 %v337_v15  ;;  %v376_v39 = vmul.f32 %v360_v20, %v248_v29  ;;  %v341_v45 = vmul.f32 0.7978846, %v325_v25  ;;  %v250_v49 = vmul.f32 0.5, %v1433_v41 }
  0xeb   :  { %v359_v26 = vadd.f32 1.0, %v1214_v19  ;;  %1233 = vtanh.f32 %v338_v23  ;;  %v251_v50 = vmul.f32 0.5, %v1465_v4  ;;  %v342_v48 = vmul.f32 0.7978846, %v326_v32  ;;  %v749_v32 = vld [vmem:[%s1801_s5 + $0x28] sm:$0xff] }
  0xec   :  { %1235 = vtanh.f32 %v339_v27  ;;  %v253_v28 = vmul.f32 0.5, %v1485_v21  ;;  %v252_v41 = vmul.f32 0.5, %v1452_v58  ;;  %v254_v3 = vmul.f32 0.5, %v1469_v8 }
  0xed   :  { %v375_v33 = vmul.f32 %v359_v26, %v247_v22  ;;  %1237 = vtanh.f32 %v340_v37  ;;  %v255_v21 = vmul.f32 0.5, %v1436_v42  ;;  %v256_v11 = vmul.f32 0.5, %v1428_v36  ;;  %v746_v37 = vld [vmem:[%s1801_s5 + $0x10] sm:$0xff] }
  0xee   :  { %v1216_v30 = vpop.eup %1215  ;;  %1239 = vtanh.f32 %v341_v45  ;;  %v257_v12 = vmul.f32 0.5, %v1448_v54  ;;  %v258_v18 = vmul.f32 0.5, %v1459_v0  ;;  %v259_v19 = vmul.f32 0.5, %v1478_v16 }
  0xef   :  { %v1218_v38 = vpop.eup %1217  ;;  %v361_v35 = vadd.f32 1.0, %v1216_v30  ;;  %1139 = vmatprep.mubr.msk.f32.mxu1 %vm406_vm1, %v375_v33  ;;  %1241 = vtanh.f32 %v342_v48  ;;  %v260_v54 = vmul.f32 0.5, %v1489_v24  ;;  %v261_v26 = vmul.f32 0.5, %v1499_v34  ;;  %v751_v24 = vld [vmem:[%s1801_s5 + $0x38] sm:$0xff]  ;;  %v750_v34 = vld [vmem:[%s1801_s5 + $0x30] sm:$0xff] }
  0xf0   :  { %v1220_v43 = vpop.eup %1219  ;;  %v362_v44 = vadd.f32 1.0, %v1218_v38  ;;  %1140 = vmatmul.mubr.msk.f32.vlgmr.msra.gmra.mxu1 %vm406_vm1, %v376_v39  ;;  %v262_v16 = vmul.f32 0.5, %v1508_v46  ;;  %1163 = vmatprep.subr.mxu0 %v751_v24  ;;  %v748_v46 = vld [vmem:[%s1801_s5 + $0x20] sm:$0xff]  ;;  %v747_v33 = vld [vmem:[%s1801_s5 + $0x18] sm:$0xff]  ;;  %v745_v38 = vld [vmem:[%s1801_s5 + $0x8] sm:$0xff] }
  0xf1   :  { %v1222_v47 = vpop.eup %1221  ;;  %v377_v31 = vmul.f32 %v361_v35, %v249_v40  ;;  %v363_v51 = vadd.f32 1.0, %v1220_v43  ;;  %1164 = vmatpush3.msra.mxu0 %v751_v24  ;;  %v744_v39 = vld [vmem:[%s1801_s5] sm:$0xff] }
  0xf2   :  { %v378_v53 = vmul.f32 %v362_v44, %v250_v49  ;;  %v364_v56 = vadd.f32 1.0, %v1222_v47  ;;  %1165 = vmatprep.subr.mxu0 %v750_v34  ;;  %v1591_v40 = vld [vmem:[%s1802_s4] ss:$0 sm:$0xff] }
  0xf3   :  { %v1224_v52 = vpop.eup %1223  ;;  %1142 = vmatprep.mubr.msk.f32.mxu1 %vm406_vm1, %v377_v31  ;;  %v379_v55 = vmul.f32 %v363_v51, %v251_v50  ;;  %1166 = vmatpush3.msra.mxu0 %v750_v34 }
  0xf4   :  { %v365_v57 = vadd.f32 1.0, %v1224_v52  ;;  %v1226_v59 = vpop.eup %1225  ;;  %1143 = vmatmul.mubr.msk.f32.gmra.mxu1 %vm406_vm1, %v378_v53  ;;  %v380_v61 = vmul.f32 %v364_v56, %v252_v41  ;;  %1167 = vmatprep.subr.mxu0 %v749_v32 }
  0xf5   :  { %v1228_v60 = vpop.eup %1227  ;;  %1145 = vmatprep.mubr.msk.f32.mxu1 %vm406_vm1, %v379_v55  ;;  %v366_v62 = vadd.f32 1.0, %v1226_v59  ;;  %1168 = vmatpush3.msra.mxu0 %v749_v32 }
  0xf6   :  { %v381_v4 = vmul.f32 %v365_v57, %v253_v28  ;;  %v1230_v63 = vpop.eup %1229  ;;  %v367_v1 = vadd.f32 1.0, %v1228_v60  ;;  %1169 = vmatprep.subr.mxu0 %v748_v46 }
  0xf7   :  { %v1232_v2 = vpop.eup %1231  ;;  %v382_v5 = vmul.f32 %v366_v62, %v254_v3  ;;  %v368_v6 = vadd.f32 1.0, %v1230_v63  ;;  %1170 = vmatpush3.msra.mxu0 %v748_v46 }
  0xf8   :  { %1146 = vmatmul.mubr.msk.f32.gmra.mxu1 %vm406_vm1, %v380_v61  ;;  %v1234_v58 = vpop.eup %1233  ;;  %v383_v7 = vmul.f32 %v367_v1, %v255_v21  ;;  %v369_v9 = vadd.f32 1.0, %v1232_v2  ;;  %1171 = vmatprep.subr.mxu0 %v747_v33 }
  0xf9   :  { %1148 = vmatprep.mubr.msk.f32.mxu1 %vm406_vm1, %v381_v4  ;;  %v1236_v10 = vpop.eup %1235  ;;  %v384_v8 = vmul.f32 %v368_v6, %v256_v11  ;;  %v370_v14 = vadd.f32 1.0, %v1234_v58  ;;  %1172 = vmatpush3.msra.mxu0 %v747_v33 }
  0xfa   :  { %v1238_v13 = vpop.eup %1237  ;;  %v385_v15 = vmul.f32 %v369_v9, %v257_v12  ;;  %v371_v17 = vadd.f32 1.0, %v1236_v10  ;;  %1173 = vmatprep.subr.mxu0 %v746_v37 }
  0xfb   :  { %v1240_v42 = vpop.eup %1239  ;;  %v386_v20 = vmul.f32 %v370_v14, %v258_v18  ;;  %v372_v36 = vadd.f32 1.0, %v1238_v13  ;;  %1174 = vmatpush3.msra.mxu0 %v746_v37 }
  0xfc   :  { %1149 = vmatmul.mubr.msk.f32.gmra.mxu1 %vm406_vm1, %v382_v5  ;;  %v1242_v22 = vpop.eup %1241  ;;  %v387_v23 = vmul.f32 %v371_v17, %v259_v19  ;;  %v373_v25 = vadd.f32 1.0, %v1240_v42  ;;  %1175 = vmatprep.subr.mxu0 %v745_v38 }
  0xfd   :  { %1151 = vmatprep.mubr.msk.f32.mxu1 %vm406_vm1, %v383_v7  ;;  %v388_v27 = vmul.f32 %v372_v36, %v260_v54  ;;  %v374_v29 = vadd.f32 1.0, %v1242_v22  ;;  %1176 = vmatpush3.msra.mxu0 %v745_v38 }
  0xfe   :  { %v389_v0 = vmul.f32 %v373_v25, %v261_v26  ;;  %1177 = vmatprep.subr.mxu0 %v744_v39 }
  0xff   :  { %v390_v30 = vmul.f32 %v374_v29, %v262_v16  ;;  %1178 = vmatpush3.msra.mxu0 %v744_v39 }
 0x100   :  { %1152 = vmatmul.mubr.msk.f32.gmra.mxu1 %vm406_vm1, %v384_v8 }
 0x101   :  { %1154 = vmatprep.mubr.msk.f32.mxu1 %vm406_vm1, %v385_v15 }
 0x104   :  { %1155 = vmatmul.mubr.msk.f32.gmra.mxu1 %vm406_vm1, %v386_v20 }
 0x105   :  { %1157 = vmatprep.mubr.msk.f32.mxu1 %vm406_vm1, %v387_v23 }
 0x108   :  { %1158 = vmatmul.mubr.msk.f32.gmra.mxu1 %vm406_vm1, %v388_v27 }
 0x109   :  { %1160 = vmatprep.mubr.msk.f32.mxu1 %vm406_vm1, %v389_v0 }
 0x10c   :  { %1161 = vmatmul.mubr.msk.f32.gmra.mxu1 %vm406_vm1, %v390_v30 }
 0x1b0   :  { %v1141_v35 = vpop.f32.mrf.mxu1 }
 0x1b1   :  { %v527_v43 = vadd.f32 %v1141_v35, %v1591_v40 }
 0x1b2   :  { %v521_v44 = vpop.f32.mrf.mxu1 }
 0x1b3   :  { %v617_v45 = vmul.f32 0.044715, %v527_v43  ;;  %v1595_v47 = vadd.f32 %v1591_v40, %v521_v44  ;;  %v601_v37 = vmul.f32 0.5, %v527_v43 }
 0x1b4   :  { %v1144_v31 = vpop.f32.mrf.mxu1 }
 0x1b5   :  { %v633_v49 = vmul.f32 %v617_v45, %v527_v43  ;;  %v616_v50 = vmul.f32 0.044715, %v1595_v47  ;;  %v1599_v51 = vadd.f32 %v1144_v31, %v1591_v40 }
 0x1b6   :  { %v531_v52 = vpop.f32.mrf.mxu1 }
 0x1b7   :  { %v649_v48 = vmul.f32 %v633_v49, %v527_v43  ;;  %v632_v53 = vmul.f32 %v616_v50, %v1595_v47  ;;  %v619_v55 = vmul.f32 0.044715, %v1599_v51  ;;  %v1604_v56 = vadd.f32 %v1591_v40, %v531_v52 }
 0x1b8   :  { %v1147_v57 = vpop.f32.mrf.mxu1 }
 0x1b9   :  { %v665_v59 = vadd.f32 %v649_v48, %v527_v43  ;;  %v648_v28 = vmul.f32 %v632_v53, %v1595_v47  ;;  %v635_v60 = vmul.f32 %v619_v55, %v1599_v51  ;;  %v618_v41 = vmul.f32 0.044715, %v1604_v56 }
 0x1ba   :  { %v1610_v4 = vadd.f32 %v1147_v57, %v1591_v40  ;;  %v541_v61 = vpop.f32.mrf.mxu1  ;;  %v600_v43 = vmul.f32 0.5, %v1595_v47 }
 0x1bb   :  { %v681_v62 = vmul.f32 0.7978846, %v665_v59  ;;  %v664_v63 = vadd.f32 %v648_v28, %v1595_v47  ;;  %v651_v1 = vmul.f32 %v635_v60, %v1599_v51  ;;  %v634_v2 = vmul.f32 %v618_v41, %v1604_v56 }
 0x1bc   :  { %v621_v3 = vmul.f32 0.044715, %v1610_v4  ;;  %v1617_v21 = vadd.f32 %v1591_v40, %v541_v61  ;;  %v1150_v5 = vpop.f32.mrf.mxu1  ;;  %v603_v61 = vmul.f32 0.5, %v1599_v51 }
 0x1bd   :  { %1243 = vtanh.f32 %v681_v62  ;;  %v667_v6 = vadd.f32 %v651_v1, %v1599_v51  ;;  %v650_v58 = vmul.f32 %v634_v2, %v1604_v56  ;;  %v1622_v7 = vadd.f32 %v1150_v5, %v1591_v40 }
 0x1be   :  { %v637_v9 = vmul.f32 %v621_v3, %v1610_v4  ;;  %v620_v10 = vmul.f32 0.044715, %v1617_v21  ;;  %v551_v11 = vpop.f32.mrf.mxu1  ;;  %v680_v12 = vmul.f32 0.7978846, %v664_v63  ;;  %v602_v2 = vmul.f32 0.5, %v1604_v56 }
 0x1bf   :  { %v666_v13 = vadd.f32 %v650_v58, %v1604_v56  ;;  %v623_v8 = vmul.f32 0.044715, %v1622_v7  ;;  %v1629_v14 = vadd.f32 %v1591_v40, %v551_v11  ;;  %v683_v15 = vmul.f32 0.7978846, %v667_v6 }
 0x1c0   :  { %v653_v17 = vmul.f32 %v637_v9, %v1610_v4  ;;  %v636_v42 = vmul.f32 %v620_v10, %v1617_v21  ;;  %v1153_v18 = vpop.f32.mrf.mxu1  ;;  %1245 = vtanh.f32 %v680_v12 }
 0x1c1   :  { %v639_v19 = vmul.f32 %v623_v8, %v1622_v7  ;;  %v622_v20 = vmul.f32 0.044715, %v1629_v14  ;;  %v1636_v36 = vadd.f32 %v1153_v18, %v1591_v40  ;;  %v682_v22 = vmul.f32 0.7978846, %v666_v13 }
 0x1c2   :  { %v669_v23 = vadd.f32 %v653_v17, %v1610_v4  ;;  %v652_v25 = vmul.f32 %v636_v42, %v1617_v21  ;;  %v561_v54 = vpop.f32.mrf.mxu1  ;;  %1247 = vtanh.f32 %v683_v15 }
 0x1c3   :  { %v655_v26 = vmul.f32 %v639_v19, %v1622_v7  ;;  %v638_v27 = vmul.f32 %v622_v20, %v1629_v14  ;;  %v625_v29 = vmul.f32 0.044715, %v1636_v36  ;;  %v1644_v0 = vadd.f32 %v1591_v40, %v561_v54 }
 0x1c4   :  { %v668_v16 = vadd.f32 %v652_v25, %v1617_v21  ;;  %v1156_v30 = vpop.f32.mrf.mxu1  ;;  %1249 = vtanh.f32 %v682_v22  ;;  %v685_v24 = vmul.f32 0.7978846, %v669_v23 }
 0x1c5   :  { %v671_v34 = vadd.f32 %v655_v26, %v1622_v7  ;;  %v654_v32 = vmul.f32 %v638_v27, %v1629_v14  ;;  %v641_v46 = vmul.f32 %v625_v29, %v1636_v36  ;;  %v624_v33 = vmul.f32 0.044715, %v1644_v0 }
 0x1c6   :  { %v1652_v38 = vadd.f32 %v1156_v30, %v1591_v40  ;;  %v571_v39 = vpop.f32.mrf.mxu1  ;;  %v684_v35 = vmul.f32 0.7978846, %v668_v16  ;;  %1251 = vtanh.f32 %v685_v24 }
 0x1c7   :  { %v670_v44 = vadd.f32 %v654_v32, %v1629_v14  ;;  %v657_v45 = vmul.f32 %v641_v46, %v1636_v36  ;;  %v640_v31 = vmul.f32 %v624_v33, %v1644_v0  ;;  %v1658_v49 = vadd.f32 %v1591_v40, %v571_v39 }
 0x1c8   :  { %v627_v50 = vmul.f32 0.044715, %v1652_v38  ;;  %v1159_v52 = vpop.f32.mrf.mxu1  ;;  %1253 = vtanh.f32 %v684_v35  ;;  %v687_v48 = vmul.f32 0.7978846, %v671_v34 }
 0x1c9   :  { %v673_v53 = vadd.f32 %v657_v45, %v1636_v36  ;;  %v656_v55 = vmul.f32 %v640_v31, %v1644_v0  ;;  %v626_v57 = vmul.f32 0.044715, %v1658_v49  ;;  %v1666_v59 = vadd.f32 %v1159_v52, %v1591_v40 }
 0x1ca   :  { %v1244_v28 = vpop.eup %1243  ;;  %v643_v60 = vmul.f32 %v627_v50, %v1652_v38  ;;  %v581_v41 = vpop.f32.mrf.mxu1  ;;  %v686_v62 = vmul.f32 0.7978846, %v670_v44  ;;  %1255 = vtanh.f32 %v687_v48 }
 0x1cb   :  { %v672_v47 = vadd.f32 %v656_v55, %v1644_v0  ;;  %v642_v63 = vmul.f32 %v626_v57, %v1658_v49  ;;  %v629_v1 = vmul.f32 0.044715, %v1666_v59  ;;  %v713_v3 = vadd.f32 1.0, %v1244_v28 }
 0x1cc   :  { %v659_v5 = vmul.f32 %v643_v60, %v1652_v38  ;;  %v1676_v6 = vadd.f32 %v1591_v40, %v581_v41  ;;  %v1162_v58 = vpop.f32.mrf.mxu1  ;;  %1257 = vtanh.f32 %v686_v62  ;;  %v689_v12 = vmul.f32 0.7978846, %v673_v53 }
 0x1cd   :  { %v1246_v9 = vpop.eup %1245  ;;  %v658_v51 = vmul.f32 %v642_v63, %v1658_v49  ;;  %v645_v10 = vmul.f32 %v629_v1, %v1666_v59  ;;  %v1681_v11 = vadd.f32 %v1162_v58, %v1591_v40  ;;  %v688_v17 = vmul.f32 0.7978846, %v672_v47 }
 0x1ce   :  { %v675_v13 = vadd.f32 %v659_v5, %v1652_v38  ;;  %v628_v56 = vmul.f32 0.044715, %v1676_v6  ;;  %v591_v8 = vpop.f32.mrf.mxu1  ;;  %v712_v15 = vadd.f32 1.0, %v1246_v9  ;;  %v729_v27 = vmul.f32 %v713_v3, %v601_v37 }
 0x1cf   :  { %v1248_v42 = vpop.eup %1247  ;;  %v674_v18 = vadd.f32 %v658_v51, %v1658_v49  ;;  %v661_v19 = vmul.f32 %v645_v10, %v1666_v59  ;;  %v631_v20 = vmul.f32 0.044715, %v1681_v11  ;;  %v1689_v22 = vadd.f32 %v1591_v40, %v591_v8 }
 0x1d0   :  { %v644_v23 = vmul.f32 %v628_v56, %v1676_v6  ;;  %v728_v25 = vmul.f32 %v712_v15, %v600_v43  ;;  %v715_v54 = vadd.f32 1.0, %v1248_v42  ;;  %1259 = vtanh.f32 %v688_v17 }
 0x1d1   :  { %v1250_v26 = vpop.eup %1249  ;;  %v647_v29 = vmul.f32 %v631_v20, %v1681_v11  ;;  %v630_v16 = vmul.f32 0.044715, %v1689_v22  ;;  %1261 = vtanh.f32 %v689_v12  ;;  %v677_v30 = vadd.f32 %v661_v19, %v1666_v59 }
 0x1d2   :  { %v660_v24 = vmul.f32 %v644_v23, %v1676_v6  ;;  %1179 = vmatprep.mubr.msk.f32.mxu0 %vm406_vm1, %v728_v25  ;;  %v714_v40 = vadd.f32 1.0, %v1250_v26  ;;  %v690_v34 = vmul.f32 0.7978846, %v674_v18  ;;  %v691_v37 = vmul.f32 0.7978846, %v675_v13 }
 0x1d3   :  { %v1252_v32 = vpop.eup %1251  ;;  %v663_v46 = vmul.f32 %v647_v29, %v1681_v11  ;;  %v646_v33 = vmul.f32 %v630_v16, %v1689_v22  ;;  %1180 = vmatmul.mubr.msk.f32.vlgmr.msra.gmra.mxu0 %vm406_vm1, %v729_v27  ;;  %v731_v44 = vmul.f32 %v715_v54, %v603_v61  ;;  %v604_v43 = vmul.f32 0.5, %v1617_v21 }
 0x1d4   :  { %v676_v39 = vadd.f32 %v660_v24, %v1676_v6  ;;  %v730_v35 = vmul.f32 %v714_v40, %v602_v2  ;;  %1263 = vtanh.f32 %v690_v34  ;;  %v717_v52 = vadd.f32 1.0, %v1252_v32 }
 0x1d5   :  { %v1254_v45 = vpop.eup %1253  ;;  %v679_v31 = vadd.f32 %v663_v46, %v1681_v11  ;;  %v662_v50 = vmul.f32 %v646_v33, %v1689_v22  ;;  %1265 = vtanh.f32 %v691_v37  ;;  %v693_v55 = vmul.f32 0.7978846, %v677_v30 }
 0x1d6   :  { %1182 = vmatprep.mubr.msk.f32.mxu0 %vm406_vm1, %v730_v35  ;;  %v716_v48 = vadd.f32 1.0, %v1254_v45  ;;  %v692_v53 = vmul.f32 0.7978846, %v676_v39  ;;  %v605_v60 = vmul.f32 0.5, %v1610_v4  ;;  %v606_v21 = vmul.f32 0.5, %v1629_v14 }
 0x1d7   :  { %v1256_v57 = vpop.eup %1255  ;;  %v678_v28 = vadd.f32 %v662_v50, %v1689_v22  ;;  %1183 = vmatmul.mubr.msk.f32.gmra.mxu0 %vm406_vm1, %v731_v44  ;;  %v695_v41 = vmul.f32 0.7978846, %v679_v31  ;;  %v607_v3 = vmul.f32 0.5, %v1622_v7  ;;  %v608_v51 = vmul.f32 0.5, %v1644_v0 }
 0x1d8   :  { %v732_v61 = vmul.f32 %v716_v48, %v604_v43  ;;  %1267 = vtanh.f32 %v692_v53  ;;  %v733_v47 = vmul.f32 %v717_v52, %v605_v60  ;;  %v719_v63 = vadd.f32 1.0, %v1256_v57 }
 0x1d9   :  { %v1258_v62 = vpop.eup %1257  ;;  %1269 = vtanh.f32 %v693_v55  ;;  %v694_v1 = vmul.f32 0.7978846, %v678_v28  ;;  %v609_v14 = vmul.f32 0.5, %v1636_v36  ;;  %v610_v7 = vmul.f32 0.5, %v1658_v49 }
 0x1da   :  { %1185 = vmatprep.mubr.msk.f32.mxu0 %vm406_vm1, %v732_v61  ;;  %v718_v2 = vadd.f32 1.0, %v1258_v62  ;;  %1271 = vtanh.f32 %v695_v41  ;;  %v735_v58 = vmul.f32 %v719_v63, %v607_v3  ;;  %v611_v42 = vmul.f32 0.5, %v1652_v38 }
 0x1db   :  { %1186 = vmatmul.mubr.msk.f32.gmra.mxu0 %vm406_vm1, %v733_v47  ;;  %1273 = vtanh.f32 %v694_v1  ;;  %v612_v36 = vmul.f32 0.5, %v1676_v6  ;;  %v613_v49 = vmul.f32 0.5, %v1666_v59  ;;  %v614_v38 = vmul.f32 0.5, %v1689_v22  ;;  %v1006_v59 = vld [vmem:[%s1803_s6] ss:$0 sm:$0xff] }
 0x1dc   :  { %v734_v4 = vmul.f32 %v718_v2, %v606_v21  ;;  %v615_v6 = vmul.f32 0.5, %v1681_v11 }
 0x1dd   :  { %v1260_v5 = vpop.eup %1259 }
 0x1de   :  { %v1262_v9 = vpop.eup %1261  ;;  %1188 = vmatprep.mubr.msk.f32.mxu0 %vm406_vm1, %v734_v4  ;;  %v720_v10 = vadd.f32 1.0, %v1260_v5 }
 0x1df   :  { %1189 = vmatmul.mubr.msk.f32.gmra.mxu0 %vm406_vm1, %v735_v58  ;;  %v721_v12 = vadd.f32 1.0, %v1262_v9 }
 0x1e0   :  { %v736_v13 = vmul.f32 %v720_v10, %v608_v51 }
 0x1e1   :  { %v1264_v56 = vpop.eup %1263  ;;  %v737_v8 = vmul.f32 %v721_v12, %v609_v14 }
 0x1e2   :  { %v1266_v15 = vpop.eup %1265  ;;  %1191 = vmatprep.mubr.msk.f32.mxu0 %vm406_vm1, %v736_v13  ;;  %v722_v17 = vadd.f32 1.0, %v1264_v56 }
 0x1e3   :  { %1192 = vmatmul.mubr.msk.f32.gmra.mxu0 %vm406_vm1, %v737_v8  ;;  %v723_v0 = vadd.f32 1.0, %v1266_v15 }
 0x1e4   :  { %v738_v18 = vmul.f32 %v722_v17, %v610_v7 }
 0x1e5   :  { %v1268_v19 = vpop.eup %1267  ;;  %v739_v20 = vmul.f32 %v723_v0, %v611_v42 }
 0x1e6   :  { %v1270_v23 = vpop.eup %1269  ;;  %1194 = vmatprep.mubr.msk.f32.mxu0 %vm406_vm1, %v738_v18  ;;  %v724_v25 = vadd.f32 1.0, %v1268_v19 }
 0x1e7   :  { %v1272_v54 = vpop.eup %1271  ;;  %1195 = vmatmul.mubr.msk.f32.gmra.mxu0 %vm406_vm1, %v739_v20  ;;  %v725_v26 = vadd.f32 1.0, %v1270_v23 }
 0x1e8   :  { %v1274_v27 = vpop.eup %1273  ;;  %v740_v29 = vmul.f32 %v724_v25, %v612_v36  ;;  %v727_v24 = vadd.f32 1.0, %v1272_v54 }
 0x1e9   :  { %v741_v16 = vmul.f32 %v725_v26, %v613_v49  ;;  %v726_v30 = vadd.f32 1.0, %v1274_v27 }
 0x1ea   :  { %1197 = vmatprep.mubr.msk.f32.mxu0 %vm406_vm1, %v740_v29  ;;  %v743_v34 = vmul.f32 %v727_v24, %v615_v6 }
 0x1eb   :  { %1198 = vmatmul.mubr.msk.f32.gmra.mxu0 %vm406_vm1, %v741_v16  ;;  %v742_v40 = vmul.f32 %v726_v30, %v614_v38 }
 0x1ed   :  { %1200 = vmatprep.mubr.msk.f32.mxu0 %vm406_vm1, %v742_v40 }
 0x1ef   :  { %1201 = vmatmul.mubr.msk.f32.gmra.mxu0 %vm406_vm1, %v743_v34 }
 0x293   :  { %v1181_v32 = vpop.f32.mrf.mxu0 }
 0x294   :  { %v879_v22 = vadd.f32 %v1181_v32, %v1006_v59 }
 0x295   :  { %v873_v46 = vpop.f32.mrf.mxu0 }
 0x296   :  { %953 = vst.msk [vmem:[%s1804_s7 + $0x8] sm:$0xff] %vm53_vm0, %v879_v22  ;;  %v874_v33 = vadd.f32 %v1006_v59, %v873_v46 }
 0x297   :  { %v1184_v37 = vpop.f32.mrf.mxu0 }
 0x298   :  { %952 = vst.msk [vmem:[%s1804_s7] sm:$0xff] %vm53_vm0, %v874_v33  ;;  %v889_v11 = vadd.f32 %v1184_v37, %v1006_v59 }
 0x299   :  { %v883_v39 = vpop.f32.mrf.mxu0 }
 0x29a   :  { %955 = vst.msk [vmem:[%s1804_s7 + $0x18] sm:$0xff] %vm53_vm0, %v889_v11  ;;  %v884_v35 = vadd.f32 %v1006_v59, %v883_v39 }
 0x29b   :  { %v1187_v44 = vpop.f32.mrf.mxu0 }
 0x29c   :  { %954 = vst.msk [vmem:[%s1804_s7 + $0x10] sm:$0xff] %vm53_vm0, %v884_v35  ;;  %v899_v45 = vadd.f32 %v1187_v44, %v1006_v59 }
 0x29d   :  { %v893_v31 = vpop.f32.mrf.mxu0 }
 0x29e   :  { %957 = vst.msk [vmem:[%s1804_s7 + $0x28] sm:$0xff] %vm53_vm0, %v899_v45  ;;  %v894_v50 = vadd.f32 %v1006_v59, %v893_v31 }
 0x29f   :  { %v1190_v52 = vpop.f32.mrf.mxu0 }
 0x2a0   :  { %956 = vst.msk [vmem:[%s1804_s7 + $0x20] sm:$0xff] %vm53_vm0, %v894_v50  ;;  %v909_v43 = vadd.f32 %v1190_v52, %v1006_v59 }
 0x2a1   :  { %v903_v48 = vpop.f32.mrf.mxu0 }
 0x2a2   :  { %959 = vst.msk [vmem:[%s1804_s7 + $0x38] sm:$0xff] %vm53_vm0, %v909_v43  ;;  %v904_v53 = vadd.f32 %v1006_v59, %v903_v48 }
 0x2a3   :  { %v1193_v55 = vpop.f32.mrf.mxu0 }
 0x2a4   :  { %958 = vst.msk [vmem:[%s1804_s7 + $0x30] sm:$0xff] %vm53_vm0, %v904_v53  ;;  %v919_v57 = vadd.f32 %v1193_v55, %v1006_v59 }
 0x2a5   :  { %v913_v28 = vpop.f32.mrf.mxu0 }
 0x2a6   :  { %961 = vst.msk [vmem:[%s1804_s7 + $0x48] sm:$0xff] %vm53_vm0, %v919_v57  ;;  %v914_v60 = vadd.f32 %v1006_v59, %v913_v28 }
 0x2a7   :  { %v1196_v41 = vpop.f32.mrf.mxu0 }
 0x2a8   :  { %960 = vst.msk [vmem:[%s1804_s7 + $0x40] sm:$0xff] %vm53_vm0, %v914_v60  ;;  %v929_v61 = vadd.f32 %v1196_v41, %v1006_v59 }
 0x2a9   :  { %v923_v62 = vpop.f32.mrf.mxu0 }
 0x2aa   :  { %963 = vst.msk [vmem:[%s1804_s7 + $0x58] sm:$0xff] %vm53_vm0, %v929_v61  ;;  %v924_v47 = vadd.f32 %v1006_v59, %v923_v62 }
 0x2ab   :  { %v1199_v63 = vpop.f32.mrf.mxu0 }
 0x2ac   :  { %962 = vst.msk [vmem:[%s1804_s7 + $0x50] sm:$0xff] %vm53_vm0, %v924_v47  ;;  %v939_v1 = vadd.f32 %v1199_v63, %v1006_v59 }
 0x2ad   :  { %v933_v21 = vpop.f32.mrf.mxu0 }
 0x2ae   :  { %965 = vst.msk [vmem:[%s1804_s7 + $0x68] sm:$0xff] %vm53_vm0, %v939_v1  ;;  %v934_v2 = vadd.f32 %v1006_v59, %v933_v21 }
 0x2af   :  { %v1202_v3 = vpop.f32.mrf.mxu0 }
 0x2b0   :  { %964 = vst.msk [vmem:[%s1804_s7 + $0x60] sm:$0xff] %vm53_vm0, %v934_v2  ;;  %v949_v4 = vadd.f32 %v1202_v3, %v1006_v59 }
 0x2b1   :  { %v943_v5 = vpop.f32.mrf.mxu0 }
 0x2b2   :  { %967 = vst.msk [vmem:[%s1804_s7 + $0x78] sm:$0xff] %vm53_vm0, %v949_v4  ;;  %v944_v58 = vadd.f32 %v1006_v59, %v943_v5 }
 0x2b4   :  { %966 = vst.msk [vmem:[%s1804_s7 + $0x70] sm:$0xff] %vm53_vm0, %v944_v58 }

</bundles_post_ra>
